<compile_context>
chip_gen: v7x
topology: tpu7x:2x2x1
jax: 0.10.0
libtpu: 0.0.40
codegen_flags: <defaults>
</compile_context>

<pallas_src>
import functools

import jax
import jax.numpy as jnp
from jax import lax
from jax.experimental import pallas as pl
from jax.experimental.pallas import tpu as pltpu


def _round_up(v, m):
    return ((v + m - 1) // m) * m


def _pick_tile(limit, cap):
    """Largest power-of-two multiple of 128 that is <= min(limit, cap)."""
    t = 128
    while t * 2 <= min(limit, cap):
        t *= 2
    return t


# --------------------------------------------------------------------------
# Kernel 1: linear projection + attention logits (both on the MXU, bf16 ops)
# --------------------------------------------------------------------------
def _proj_kernel(x_ref, w_ref, a_ref, h_ref, alpha_ref):
    """x_ref (T, Fp) bf16, w_ref (Fp, HCp) bf16, a_ref (HCp, AHp) bf16
       -> h_ref (T, HCp) bf16, alpha_ref (T, AHp) f32
       alpha columns [0:H] = alpha_src, [H:2H] = alpha_dst."""
    h = jnp.dot(x_ref[...], w_ref[...], preferred_element_type=jnp.float32)
    h16 = h.astype(jnp.bfloat16)
    alpha_ref[...] = jnp.dot(h16, a_ref[...], preferred_element_type=jnp.float32)
    h_ref[...] = h16


# --------------------------------------------------------------------------
# Kernel 2: masked online softmax + attention-weighted aggregation
# --------------------------------------------------------------------------
def _attn_kernel(flags_ref, alphad_ref, asrct_ref, hbd_ref, adj_ref, bias_ref,
                 out_ref, m_sc, acc_sc, *, heads, out_channels, hc, hc_pad,
                 ts, n_src_tiles, hbd_resident):
    """Grid = (dst tiles, src tiles).  Flash-style online softmax over src tiles.

    flags_ref  : SMEM (n_i*n_j,) int32  1 iff adjacency tile (i, j) has edges
    alphad_ref : (TM, AHp)  f32   alpha logits for the dst tile (cols H:2H used)
    asrct_ref  : (Hp, TS)   f32   alpha_src transposed, row hd = head hd
    hbd_ref    : (H*TS, HCp) or (J*H*TS, HCp) bf16  stacked per-head features
                 with a ones column at lane hc+hd (denominator trick)
    adj_ref    : (TM, TS)   int8  dense adjacency tile, adj[i, j] != 0 iff j->i
    bias_ref   : (1, HCp)   f32   GATConv output bias (zero-padded)
    out_ref    : (TM, HCp)  f32   concatenated heads (zero-padded lanes)
    """
    tm = out_ref.shape[0]
    i = pl.program_id(0)
    j = pl.program_id(1)

    @pl.when(j == 0)
    def _init():
        # Running max clamped to >= 0: exp(-1e30 - m_new) underflows to exact 0
        # on masked lanes, so no second select on p is needed.  Caveat: rows
        # whose valid logits were all <= ~-80 would also underflow; GAT-scale
        # logits are nowhere near that.
        m_sc[...] = jnp.zeros_like(m_sc)
        acc_sc[...] = jnp.zeros_like(acc_sc)

    @pl.when(flags_ref[i * n_src_tiles + j] > 0)
    def _compute():
        mask = adj_ref[...].astype(jnp.float32) > 0.0            # (TM, TS)
        lane = lax.broadcasted_iota(jnp.int32, (tm, hc_pad), 1)
        # lane -> head: feature lanes [0, hc) -> lane // C;
        #               denominator lanes [hc, hc+H) -> lane - hc.
        head_of_lane = jnp.where(lane < hc, lane // out_channels, lane - hc)

        corr_full = jnp.zeros((tm, hc_pad), jnp.float32)
        dotres = jnp.zeros((tm, hc_pad), jnp.float32)
        for hd in range(heads):
            a_d = alphad_ref[:, heads + hd:heads + hd + 1]        # (TM, 1) dst
            a_s = asrct_ref[hd:hd + 1, :]                         # (1, TS) src
            e = a_d + a_s                                         # (TM, TS)
            e = jnp.where(e > 0.0, e, 0.2 * e)                    # LeakyReLU(0.2)
            e = jnp.where(mask, e, -1e30)

            m_old = m_sc[:, hd:hd + 1]                            # (TM, 1)
            m_new = jnp.maximum(m_old, jnp.max(e, axis=1, keepdims=True))
            corr = jnp.exp(m_old - m_new)                         # (TM, 1)
            p = jnp.exp(e - m_new).astype(jnp.bfloat16)           # masked -> 0
            m_sc[:, hd:hd + 1] = m_new
            corr_full = jnp.where(head_of_lane == hd, corr, corr_full)

            # Lane-dense MXU dot against this head's masked feature block; the
            # ones column at lane hc+hd also produces sum(p) (the softmax
            # denominator), replacing a cross-lane XLU reduction.
            if hbd_resident:
                base = pl.multiple_of(j * heads * ts + hd * ts, 128)
                hbd = hbd_ref[pl.ds(base, ts), :]
            else:
                hbd = hbd_ref[hd * ts:(hd + 1) * ts, :]
            dotres = dotres + jnp.dot(p, hbd,
                                      preferred_element_type=jnp.float32)

        # Single full-width accumulator update (features + denominators).
        acc_sc[...] = corr_full * acc_sc[...] + dotres

    @pl.when(j == pl.num_programs(1) - 1)
    def _finalize():
        lane = lax.broadcasted_iota(jnp.int32, (tm, hc_pad), 1)
        col_head = lane // out_channels
        scale = jnp.zeros((tm, hc_pad), jnp.float32)
        for hd in range(heads):
            # Denominator for head hd lives in acc lane hc+hd.
            l = jnp.maximum(acc_sc[:, hc + hd:hc + hd + 1], jnp.float32(1e-30))
            scale = jnp.where(col_head == hd, 1.0 / l, scale)
        # Single lane-dense store; bias added once for all heads.
        out_ref[...] = (acc_sc[...] * scale + bias_ref[...]).astype(out_ref.dtype)


# --------------------------------------------------------------------------
# Wrapper: graph-structure glue in plain JAX, GAT math in Pallas
# --------------------------------------------------------------------------
def mgat_layer_forward(x, edge_index, edge_weight, modality_groups,
                       w, att_src, att_dst, bias, *, heads, out_channels):
    n, f_in = x.shape
    C = out_channels
    hc = heads * C

    # ---- tiling / padding ----
    n_pad0 = _round_up(n, 128)
    TM = _pick_tile(n_pad0, 256)            # dst tile
    TS = _pick_tile(n_pad0, 512)            # src tile
    n_pad = _round_up(n, max(TM, TS))
    TN1 = max(TM, TS)                       # kernel-1 node tile (<= 512)
    f_pad = _round_up(f_in, 128)
    hc_pad = _round_up(hc + heads, 128)     # +heads lanes hold softmax denoms
    ah_pad = _round_up(2 * heads, 128)
    hrow_pad = _round_up(heads, 8)
    ml_pad = _round_up(heads, 128)
    n_i, n_j = n_pad // TM, n_pad // TS

    # ---- VMEM budget: v7x has 64 MiB/TC, v5e/v6e have 128 MiB ----
    try:
        vmem_cap = getattr(pltpu.get_tpu_info(), "vmem_capacity_bytes",
                           64 * 1024 * 1024)
    except Exception:
        vmem_cap = 64 * 1024 * 1024
    vmem_limit = int(min(100 * 1024 * 1024, vmem_cap * 3 // 4))

    # ---- same-modality edge mask (MGATLayer preamble), vectorized ----
    node_mod = jnp.full((n,), -1, jnp.int32)
    for idx, group in enumerate(modality_groups):        # one scatter per group
        node_mod = node_mod.at[jnp.asarray(group, jnp.int32)].set(idx)
    src, dst = edge_index[0], edge_index[1]
    keep = ((node_mod[src] == node_mod[dst]) & (edge_weight != 0)).astype(jnp.int8)

    # ---- dense int8 adjacency, built directly at padded size ----
    adj_pad = jnp.zeros((n_pad, n_pad), jnp.int8)
    adj_pad = adj_pad.at[dst, src].max(keep)
    diag = jnp.arange(n)
    adj_pad = adj_pad.at[diag, diag].set(jnp.int8(1))    # forced self-loops

    # Per-(dst-tile, src-tile) "has any edge" flags for empty-tile skipping.
    flags = (adj_pad.reshape(n_i, TM, n_j, TS) != 0).any(axis=(1, 3))
    flags = flags.astype(jnp.int32).reshape(-1)
    # TODO(synk): compact to a per-dst-tile list of nonempty src tiles with a
    # data-dependent index_map so empty tiles are never even DMA'd.

    # ---- padded parameters / inputs ----
    x_pad = jnp.zeros((n_pad, f_pad), jnp.bfloat16).at[:n, :f_in].set(
        x.astype(jnp.bfloat16))
    w_pad = jnp.zeros((f_pad, hc_pad), jnp.bfloat16).at[:f_in, :hc].set(
        w.astype(jnp.bfloat16))
    bias_pad = jnp.zeros((1, hc_pad), jnp.float32).at[:, :hc].set(
        bias.reshape(1, hc).astype(jnp.float32))

    # Attention-logit matrix A (bf16): alphas = h @ A -> cols [0:H]=src, [H:2H]=dst.
    rows = jnp.arange(hc)
    head_of_row = rows // C
    A = jnp.zeros((hc_pad, ah_pad), jnp.float32)
    A = A.at[rows, head_of_row].set(att_src.reshape(-1).astype(jnp.float32))
    A = A.at[rows, heads + head_of_row].set(att_dst.reshape(-1).astype(jnp.float32))
    A = A.astype(jnp.bfloat16)

    # ---- Kernel 1: projection + attention logits ----
    h_pad, alphas = pl.pallas_call(
        _proj_kernel,
        out_shape=(jax.ShapeDtypeStruct((n_pad, hc_pad), jnp.bfloat16),
                   jax.ShapeDtypeStruct((n_pad, ah_pad), jnp.float32)),
        grid=(n_pad // TN1,),
        in_specs=[
            pl.BlockSpec((TN1, f_pad), lambda i: (i, 0)),
            pl.BlockSpec((f_pad, hc_pad), lambda i: (0, 0)),
            pl.BlockSpec((hc_pad, ah_pad), lambda i: (0, 0)),
        ],
        out_specs=(
            pl.BlockSpec((TN1, hc_pad), lambda i: (i, 0)),
            pl.BlockSpec((TN1, ah_pad), lambda i: (i, 0)),
        ),
        compiler_params=pltpu.CompilerParams(
            dimension_semantics=("parallel",), vmem_limit_bytes=vmem_limit),
    )(x_pad, w_pad, A)

    # alpha_src transposed to (heads, N): streamed per src tile in kernel 2.
    asrc_t = jnp.zeros((hrow_pad, n_pad), jnp.float32).at[:heads, :].set(
        alphas[:, :heads].T)

    # Stacked "block-diagonal + ones-column" RHS for the aggregation matmuls:
    #   rows [j*H*TS + hd*TS + t] = h[j*TS + t] masked to head hd's lanes,
    #   plus a 1.0 at lane hc+hd so p @ hbd also yields the softmax denominator.
    J = n_pad // TS
    lane = jnp.arange(hc_pad)
    head_ids = jnp.arange(heads)
    feat_mask = ((lane[None, :] // C) == head_ids[:, None]) & (lane[None, :] < hc)
    ones_mask = lane[None, :] == (hc + head_ids[:, None])
    h_bd = (h_pad.reshape(J, 1, TS, hc_pad)
            * feat_mask[None, :, None, :].astype(jnp.bfloat16)
            + ones_mask[None, :, None, :].astype(jnp.bfloat16))
    h_bd = h_bd.reshape(J * heads * TS, hc_pad)

    # Keep h_bd fully VMEM-resident when it fits the per-chip budget.
    hbd_resident = (h_bd.size * 2) <= (vmem_limit // 3)
    if hbd_resident:
        hbd_spec = pl.BlockSpec((J * heads * TS, hc_pad), lambda i, j, fl: (0, 0))
    else:
        hbd_spec = pl.BlockSpec((heads * TS, hc_pad), lambda i, j, fl: (j, 0))

    kernel = functools.partial(
        _attn_kernel, heads=heads, out_channels=C, hc=hc, hc_pad=hc_pad,
        ts=TS, n_src_tiles=n_j, hbd_resident=hbd_resident)

    # ---- Kernel 2: tiled masked softmax + aggregation ----
    out_pad = pl.pallas_call(
        kernel,
        out_shape=jax.ShapeDtypeStruct((n_pad, hc_pad), jnp.float32),
        grid_spec=pltpu.PrefetchScalarGridSpec(
            num_scalar_prefetch=1,
            grid=(n_i, n_j),
            in_specs=[
                pl.BlockSpec((TM, ah_pad), lambda i, j, fl: (i, 0)),    # alpha (dst)
                pl.BlockSpec((hrow_pad, TS), lambda i, j, fl: (0, j)),  # alpha_src^T
                hbd_spec,                                               # stacked h
                pl.BlockSpec((TM, TS), lambda i, j, fl: (i, j)),        # adj (int8)
                pl.BlockSpec((1, hc_pad), lambda i, j, fl: (0, 0)),     # bias
            ],
            out_specs=pl.BlockSpec((TM, hc_pad), lambda i, j, fl: (i, 0)),
            scratch_shapes=[
                pltpu.VMEM((TM, ml_pad), jnp.float32),   # running max per head
                pltpu.VMEM((TM, hc_pad), jnp.float32),   # weighted sums + denoms
            ]),
        compiler_params=pltpu.CompilerParams(
            dimension_semantics=("parallel", "arbitrary"),
            vmem_limit_bytes=vmem_limit),
    )(flags, alphas, asrc_t, h_bd, adj_pad, bias_pad)

    return out_pad[:n, :hc]


if __name__ == "__main__":
    # Small deterministic problem consistent with MGATLayer(in_channels=4,
    # out_channels=8, heads=2): N=8 nodes, two modality groups.
    N, IN_CH, OUT_CH, HEADS = 8, 4, 8, 2

    key = jax.random.PRNGKey(0)
    k_x, k_w, k_as, k_ad, k_b = jax.random.split(key, 5)

    x = jax.random.normal(k_x, (N, IN_CH), jnp.float32)

    # Parameters (deterministic init; PyG GATConv shapes):
    #   lin.weight : (H*C, in) -> stored transposed as (in, H*C); no lin bias
    #   att_src/att_dst : (1, H, C) -> stored as (H, C)
    #   bias : (H*C,) -> stored as (1, H*C)
    w = jax.random.normal(k_w, (IN_CH, HEADS * OUT_CH), jnp.float32) * 0.2
    att_src = jax.random.normal(k_as, (HEADS, OUT_CH), jnp.float32) * 0.2
    att_dst = jax.random.normal(k_ad, (HEADS, OUT_CH), jnp.float32) * 0.2
    bias = jax.random.normal(k_b, (1, HEADS * OUT_CH), jnp.float32) * 0.05

    # Graph: mix of intra-modality and cross-modality edges, plus a zero-weight
    # edge to exercise the nonzero filter.
    edge_index = jnp.array(
        [[0, 1, 2, 3, 4, 5, 6, 7, 0, 4, 1, 2],
         [1, 2, 3, 0, 5, 6, 7, 4, 4, 0, 5, 6]], dtype=jnp.int32)
    edge_weight = jnp.array(
        [1.0, 0.5, 2.0, 1.0, 1.0, 1.5, 1.0, 1.0, 1.0, 1.0, 0.0, 3.0],
        dtype=jnp.float32)
    modality_groups = [[0, 1, 2, 3], [4, 5, 6, 7]]

    out = mgat_layer_forward(
        x, edge_index, edge_weight, modality_groups,
        w, att_src, att_dst, bias, heads=HEADS, out_channels=OUT_CH)
    out = jax.block_until_ready(out)

    assert out.shape == (N, HEADS * OUT_CH)
    assert bool(jnp.all(jnp.isfinite(out)))
    print("KERNEL_OK")
</pallas_src>

<mosaic_0001>
module attributes {stable_mosaic.version = 11 : i64} {
  func.func @_proj_kernel(%arg0: i32, %arg1: memref<128x128xbf16, #tpu.memory_space<vmem>>, %arg2: memref<128x128xbf16, #tpu.memory_space<vmem>>, %arg3: memref<128x128xbf16, #tpu.memory_space<vmem>>, %arg4: memref<128x128xbf16, #tpu.memory_space<vmem>>, %arg5: memref<128x128xf32, #tpu.memory_space<vmem>>) attributes {dimension_semantics = [#tpu.dimension_semantics<parallel>], iteration_bounds = array<i64: 1>, scalar_prefetch = 0 : i64, scratch_operands = 0 : i64, tpu.core_type = #tpu.core_type<tc>, window_params = [{transform_indices = @transform_0, window_bounds = array<i64: 128, 128>}, {pipeline_mode = #tpu.pipeline_mode<synchronous>, transform_indices = @transform_1, window_bounds = array<i64: 128, 128>}, {pipeline_mode = #tpu.pipeline_mode<synchronous>, transform_indices = @transform_2, window_bounds = array<i64: 128, 128>}, {transform_indices = @transform_3, window_bounds = array<i64: 128, 128>}, {transform_indices = @transform_4, window_bounds = array<i64: 128, 128>}]} {
    %c0 = arith.constant 0 : index
    %c0_0 = arith.constant 0 : index
    %0 = vector.load %arg1[%c0, %c0_0] : memref<128x128xbf16, #tpu.memory_space<vmem>>, vector<128x128xbf16>
    %c0_1 = arith.constant 0 : index
    %c0_2 = arith.constant 0 : index
    %1 = vector.load %arg2[%c0_1, %c0_2] : memref<128x128xbf16, #tpu.memory_space<vmem>>, vector<128x128xbf16>
    %cst = arith.constant dense<0.000000e+00> : vector<128x128xf32>
    %2 = tpu.matmul %0, %1, %cst {dimension_numbers = #tpu.dot_dimension_numbers<[1], [0], [0], [1], [0, 0, 1, 1], [], []>} : vector<128x128xbf16>, vector<128x128xbf16>, vector<128x128xf32> -> vector<128x128xf32>
    %3 = arith.truncf %2 : vector<128x128xf32> to vector<128x128xbf16>
    %c0_3 = arith.constant 0 : index
    %c0_4 = arith.constant 0 : index
    %4 = vector.load %arg3[%c0_3, %c0_4] : memref<128x128xbf16, #tpu.memory_space<vmem>>, vector<128x128xbf16>
    %cst_5 = arith.constant dense<0.000000e+00> : vector<128x128xf32>
    %5 = tpu.matmul %3, %4, %cst_5 {dimension_numbers = #tpu.dot_dimension_numbers<[1], [0], [0], [1], [0, 0, 1, 1], [], []>} : vector<128x128xbf16>, vector<128x128xbf16>, vector<128x128xf32> -> vector<128x128xf32>
    %c0_6 = arith.constant 0 : index
    %c0_7 = arith.constant 0 : index
    %6 = vector.load %arg5[%c0_6, %c0_7] : memref<128x128xf32, #tpu.memory_space<vmem>>, vector<128x128xf32>
    tpu.vector_store %arg5[%c0_6, %c0_7], %5 {strides = array<i32>} : memref<128x128xf32, #tpu.memory_space<vmem>>, vector<128x128xf32>,
    %c0_8 = arith.constant 0 : index
    %c0_9 = arith.constant 0 : index
    %7 = vector.load %arg4[%c0_8, %c0_9] : memref<128x128xbf16, #tpu.memory_space<vmem>>, vector<128x128xbf16>
    tpu.vector_store %arg4[%c0_8, %c0_9], %3 {strides = array<i32>} : memref<128x128xbf16, #tpu.memory_space<vmem>>, vector<128x128xbf16>,
    return
  }
  func.func @transform_0(%arg0: i32) -> (i32, i32) {
    %c0_i32 = arith.constant 0 : i32
    %c0_i32_0 = arith.constant 0 : i32
    return %arg0, %c0_i32 : i32, i32
  }
  func.func @transform_1(%arg0: i32) -> (i32, i32) {
    %c0_i32 = arith.constant 0 : i32
    %c0_i32_0 = arith.constant 0 : i32
    %c0_i32_1 = arith.constant 0 : i32
    return %c0_i32, %c0_i32_0 : i32, i32
  }
  func.func @transform_2(%arg0: i32) -> (i32, i32) {
    %c0_i32 = arith.constant 0 : i32
    %c0_i32_0 = arith.constant 0 : i32
    %c0_i32_1 = arith.constant 0 : i32
    return %c0_i32, %c0_i32_0 : i32, i32
  }
  func.func @transform_3(%arg0: i32) -> (i32, i32) {
    %c0_i32 = arith.constant 0 : i32
    %c0_i32_0 = arith.constant 0 : i32
    return %arg0, %c0_i32 : i32, i32
  }
  func.func @transform_4(%arg0: i32) -> (i32, i32) {
    %c0_i32 = arith.constant 0 : i32
    %c0_i32_0 = arith.constant 0 : i32
    return %arg0, %c0_i32 : i32, i32
  }
}

</mosaic_0001>

<bundles_post_ra>
// kernel: tpu_custom_call.1
= control target key start
LH: loop header
LB: loop body
LE: loop exit
PB: predicated region body
PF: predicated region fallthrough
CT: control target
= control target key end

     0   :  { %10 = vsyncpa [#allocation3], 0  ;;  %s1039_s0 = inlined_call_operand.hbm [shape: bf16[128,128], index: 0, kind: input, shape index: {}]   ;;  %s1040_s1 = inlined_call_operand.hbm [shape: bf16[128,128], index: 1, kind: input, shape index: {}]   ;;  %s1041_s2 = inlined_call_operand.hbm [shape: bf16[128,128], index: 2, kind: input, shape index: {}]   ;;  %s1042_s3 = inlined_call_operand.hbm [shape: bf16[128,128], index: 3, kind: output, shape index: {0}]   ;;  %s1043_s4 = inlined_call_operand.hbm [shape: f32[128,128], index: 4, kind: output, shape index: {1}]  }
   0x1   :  { %11 = vsyncpa [#allocation6], 0 }
   0x2   :  { %12 = vsyncpa [#allocation4], 0 }
   0x3   :  { %13 = vsyncpa [#allocation10], 0  ;;  %s926_s15 = smov [#allocation5]   ;;  %s927_s17 = smov [#allocation2]  }
   0x4   :  { %s31_s16 = sshll.u32 %s926_s15, 4  ;;  %s19_s18 = sshll.u32 %s927_s17, 4  ;;  %s32_s16 = int_to_ptr.vmem [resolvable:$true] %s31_s16  ;;  %s960_s18 = int_to_ptr.vmem [resolvable:$true] %s19_s18 }
   0x5   :  { %s808_s21 = scalar_lea.hbm %s1040_s1, 1024 }
   0x6   :  { %p809_p0 = scmp.ne.s32.totalorder %s1040_s1, %s808_s21  ;;  %p812_p1 = scmp.lt.u32.totalorder %s808_s21, %s1040_s1 }
   0x8   :  { %p814_p2 = pnand %p812_p1, %p809_p0 }
   0xa   :  { %817 = shalt.err (!%p814_p2)
}
   0xb   :  { %s818_s26 = scalar_lea.vmem %s32_s16, 1024  ;;  %p823_p4 = scmp.lt.s32.totalorder %s32_s16, %s32_s16 }
   0xc   :  { %p819_p3 = scmp.ne.s32.totalorder %s32_s16, %s818_s26  ;;  %p824_p5 = scmp.lt.s32.totalorder %s818_s26, %s818_s26 }
   0xe   :  { %p825_p6 = por %p824_p5, %p823_p4 }
  0x10   :  { %p826_p7 = pnand %p825_p6, %p819_p3 }
  0x12   :  { %829 = shalt.err (!%p826_p7)
}
  0x13   :  { %s928_s27 = smov 64   ;;  %s929_s28 = smov 4  }
  0x14   :  { %37 = dma.hbm_to_vmem [thread:$0]  %s1040_s1, 1024, %s32_s16, [#allocation6], %s928_s27, %s928_s27, %s929_s28  }
  0x15   :  { %s830_s7 = scalar_lea.hbm %s1039_s0, 1024 }
  0x16   :  { %p831_p8 = scmp.ne.s32.totalorder %s1039_s0, %s830_s7  ;;  %p834_p9 = scmp.lt.u32.totalorder %s830_s7, %s1039_s0 }
  0x18   :  { %p836_p10 = pnand %p834_p9, %p831_p8 }
  0x1a   :  { %839 = shalt.err (!%p836_p10)
}
  0x1b   :  { %s840_s12 = scalar_lea.vmem %s960_s18, 1024  ;;  %p845_p12 = scmp.lt.s32.totalorder %s960_s18, %s960_s18 }
  0x1c   :  { %p841_p11 = scmp.ne.s32.totalorder %s960_s18, %s840_s12  ;;  %p846_p13 = scmp.lt.s32.totalorder %s840_s12, %s840_s12 }
  0x1e   :  { %p847_p0 = por %p846_p13, %p845_p12 }
  0x20   :  { %p848_p1 = pnand %p847_p0, %p841_p11 }
  0x22   :  { %851 = shalt.err (!%p848_p1)
}
  0x23   :  { %25 = dma.hbm_to_vmem [thread:$0]  %s1039_s0, 1024, %s960_s18, [#allocation3], %s928_s27, %s928_s27, %s929_s28  }
  0x24   :  { %s930_s14 = smov [#allocation7]   ;;  %s852_s19 = scalar_lea.hbm %s1041_s2, 1024 }
  0x25   :  { %s43_s15 = sshll.u32 %s930_s14, 4  ;;  %p853_p2 = scmp.ne.s32.totalorder %s1041_s2, %s852_s19  ;;  %s44_s15 = int_to_ptr.vmem [resolvable:$true] %s43_s15 }
  0x26   :  { %p856_p3 = scmp.lt.u32.totalorder %s852_s19, %s1041_s2 }
  0x28   :  { %p858_p4 = pnand %p856_p3, %p853_p2 }
  0x2a   :  { %861 = shalt.err (!%p858_p4)
}
  0x2b   :  { %s862_s24 = scalar_lea.vmem %s44_s15, 1024  ;;  %p867_p6 = scmp.lt.s32.totalorder %s44_s15, %s44_s15 }
  0x2c   :  { %p863_p5 = scmp.ne.s32.totalorder %s44_s15, %s862_s24  ;;  %p868_p7 = scmp.lt.s32.totalorder %s862_s24, %s862_s24 }
  0x2e   :  { %p869_p8 = por %p868_p7, %p867_p6 }
  0x30   :  { %p870_p9 = pnand %p869_p8, %p863_p5 }
  0x32   :  { %873 = shalt.err (!%p870_p9)
}
  0x33   :  { %49 = dma.hbm_to_vmem [thread:$0]  %s1041_s2, 1024, %s44_s15, [#allocation6], %s928_s27, %s928_s27, %s929_s28  }
  0x34   :  { %918 = dma.done.wait [#allocation3], 1024  }
  0x35   :  { %919 = vsyncadd [#allocation3], 4294966272 }
  0x36   :  { %920 = dma.done.wait [#allocation6], 2048  }
  0x37   :  { %921 = vsyncadd [#allocation6], 4294965248  ;;  %v784_v0 = vld [vmem:[#allocation5] sm:$0xff]   ;;  %v785_v1 = vld [vmem:[#allocation5 + $0x8] sm:$0xff]   ;;  %s931_s2 = smov [#allocation8]  }
  0x38   :  { %711 = vmatprep.subr.bf16.mxu0 %v784_v0  ;;  %v786_v2 = vld [vmem:[#allocation5 + $0x10] sm:$0xff]   ;;  %v787_v3 = vld [vmem:[#allocation5 + $0x18] sm:$0xff]   ;;  %v792_v4 = vld [vmem:[#allocation2] sm:$0xff]   ;;  %s547_s25 = sshll.u32 %s931_s2, 4  ;;  %s548_s25 = int_to_ptr.vmem [resolvable:$true] %s547_s25 }
  0x39   :  { %712 = vmatpush3.bf16.msra.mxu0 %v784_v0  ;;  %727 = vmatprep.mubr.bf16.mxu0 %v792_v4  ;;  %v788_v5 = vld [vmem:[#allocation5 + $0x20] sm:$0xff]   ;;  %v789_v6 = vld [vmem:[#allocation5 + $0x28] sm:$0xff]   ;;  %v790_v9 = vld [vmem:[#allocation5 + $0x30] sm:$0xff]   ;;  %s874_s26 = scalar_lea.vmem %s548_s25, 1024  ;;  %p879_p11 = scmp.lt.s32.totalorder %s548_s25, %s548_s25 }
  0x3a   :  { %713 = vmatprep.subr.bf16.mxu0 %v785_v1  ;;  %v800_v7 = vld [vmem:[#allocation7] sm:$0xff]   ;;  %v801_v8 = vld [vmem:[#allocation7 + $0x8] sm:$0xff]   ;;  %v802_v10 = vld [vmem:[#allocation7 + $0x10] sm:$0xff]   ;;  %p875_p10 = scmp.ne.s32.totalorder %s548_s25, %s874_s26  ;;  %p880_p12 = scmp.lt.s32.totalorder %s874_s26, %s874_s26 }
  0x3b   :  { %743 = vmatprep.subr.bf16.mxu1 %v800_v7  ;;  %v791_v11 = vld [vmem:[#allocation5 + $0x38] sm:$0xff]   ;;  %v804_v13 = vld [vmem:[#allocation7 + $0x20] sm:$0xff]   ;;  %v793_v14 = vld [vmem:[#allocation2 + $0x8] sm:$0xff]  }
  0x3c   :  { %744 = vmatpush3.bf16.msra.mxu1 %v800_v7  ;;  %v803_v12 = vld [vmem:[#allocation7 + $0x18] sm:$0xff]   ;;  %v794_v15 = vld [vmem:[#allocation2 + $0x10] sm:$0xff]   ;;  %v805_v16 = vld [vmem:[#allocation7 + $0x28] sm:$0xff]   ;;  %p881_p13 = por %p880_p12, %p879_p11 }
  0x3d   :  { %714 = vmatpush3.bf16.msra.mxu0 %v785_v1  ;;  %745 = vmatprep.subr.bf16.mxu1 %v801_v8  ;;  %v806_v17 = vld [vmem:[#allocation7 + $0x30] sm:$0xff]   ;;  %v795_v18 = vld [vmem:[#allocation2 + $0x18] sm:$0xff]   ;;  %v796_v19 = vld [vmem:[#allocation2 + $0x20] sm:$0xff]  }
  0x3e   :  { %715 = vmatprep.subr.bf16.mxu0 %v786_v2  ;;  %v797_v20 = vld [vmem:[#allocation2 + $0x28] sm:$0xff]   ;;  %v798_v21 = vld [vmem:[#allocation2 + $0x30] sm:$0xff]   ;;  %v799_v22 = vld [vmem:[#allocation2 + $0x38] sm:$0xff]   ;;  %p882_p0 = pnand %p881_p13, %p875_p10 }
  0x3f   :  { %v807_v23 = vld [vmem:[#allocation7 + $0x38] sm:$0xff]  }
  0x40   :  { %746 = vmatpush3.bf16.msra.mxu1 %v801_v8 }
  0x41   :  { %716 = vmatpush3.bf16.msra.mxu0 %v786_v2  ;;  %747 = vmatprep.subr.bf16.mxu1 %v802_v10 }
  0x42   :  { %717 = vmatprep.subr.bf16.mxu0 %v787_v3 }
  0x44   :  { %748 = vmatpush3.bf16.msra.mxu1 %v802_v10 }
  0x45   :  { %718 = vmatpush3.bf16.msra.mxu0 %v787_v3  ;;  %749 = vmatprep.subr.bf16.mxu1 %v803_v12 }
  0x46   :  { %719 = vmatprep.subr.bf16.mxu0 %v788_v5 }
  0x48   :  { %750 = vmatpush3.bf16.msra.mxu1 %v803_v12 }
  0x49   :  { %720 = vmatpush3.bf16.msra.mxu0 %v788_v5  ;;  %751 = vmatprep.subr.bf16.mxu1 %v804_v13 }
  0x4a   :  { %721 = vmatprep.subr.bf16.mxu0 %v789_v6 }
  0x4c   :  { %752 = vmatpush3.bf16.msra.mxu1 %v804_v13 }
  0x4d   :  { %722 = vmatpush3.bf16.msra.mxu0 %v789_v6  ;;  %753 = vmatprep.subr.bf16.mxu1 %v805_v16 }
  0x4e   :  { %723 = vmatprep.subr.bf16.mxu0 %v790_v9 }
  0x50   :  { %754 = vmatpush3.bf16.msra.mxu1 %v805_v16 }
  0x51   :  { %724 = vmatpush3.bf16.msra.mxu0 %v790_v9  ;;  %755 = vmatprep.subr.bf16.mxu1 %v806_v17 }
  0x52   :  { %725 = vmatprep.subr.bf16.mxu0 %v791_v11 }
  0x54   :  { %756 = vmatpush3.bf16.msra.mxu1 %v806_v17 }
  0x55   :  { %726 = vmatpush3.bf16.msra.mxu0 %v791_v11  ;;  %757 = vmatprep.subr.bf16.mxu1 %v807_v23 }
  0x58   :  { %728 = vmatmul.mubr.bf16.vlgmr.msra.gmra.mrb[0].mxu0 %v793_v14  ;;  %758 = vmatpush3.bf16.msra.mxu1 %v807_v23 }
  0x59   :  { %731 = vmatprep.mubr.bf16.mxu0 %v794_v15 }
  0x60   :  { %732 = vmatmul.mubr.bf16.gmra.mrb[4].mxu0 %v795_v18 }
  0x61   :  { %735 = vmatprep.mubr.bf16.mxu0 %v796_v19 }
  0x68   :  { %736 = vmatmul.mubr.bf16.gmra.mrb[8].mxu0 %v797_v20 }
  0x69   :  { %739 = vmatprep.mubr.bf16.mxu0 %v798_v21 }
  0x70   :  { %740 = vmatmul.mubr.bf16.gmra.mrb[12].mxu0 %v799_v22 }
 0x12b   :  { %v729_v24 = vpop.f32.mrb[0].mxu0 }
 0x12c   :  { %v222_v25 = vpop.f32.mrb[1].mxu0 }
 0x12d   :  { %v730_v26 = vpop.f32.mrb[2].mxu0 }
 0x12e   :  { %v286_v27 = vpack.c.bf16 %v730_v26, %v729_v24  ;;  %v225_v28 = vpop.f32.mrb[3].mxu0 }
 0x12f   :  { %v285_v29 = vpack.c.bf16 %v225_v28, %v222_v25 }
 0x130   :  { %672 = vst [vmem:[#allocation8 + $0x8] sm:$0xff] %v286_v27  }
 0x131   :  { %636 = vst [vmem:[#allocation8] sm:$0xff] %v285_v29   ;;  %759 = vmatprep.mubr.bf16.mxu1 %v285_v29 }
 0x132   :  { %760 = vmatmul.mubr.bf16.vlgmr.msra.gmra.mrb[0].mxu1 %v286_v27 }
 0x133   :  { %v733_v30 = vpop.f32.mrb[4].mxu0 }
 0x134   :  { %v238_v31 = vpop.f32.mrb[5].mxu0 }
 0x135   :  { %v734_v32 = vpop.f32.mrb[6].mxu0 }
 0x136   :  { %v288_v33 = vpack.c.bf16 %v734_v32, %v733_v30  ;;  %v241_v34 = vpop.f32.mrb[7].mxu0 }
 0x137   :  { %v287_v35 = vpack.c.bf16 %v241_v34, %v238_v31 }
 0x138   :  { %674 = vst [vmem:[#allocation8 + $0x18] sm:$0xff] %v288_v33  }
 0x139   :  { %673 = vst [vmem:[#allocation8 + $0x10] sm:$0xff] %v287_v35   ;;  %763 = vmatprep.mubr.bf16.mxu1 %v287_v35 }
 0x13a   :  { %764 = vmatmul.mubr.bf16.gmra.mrb[4].mxu1 %v288_v33 }
 0x13b   :  { %v737_v36 = vpop.f32.mrb[8].mxu0 }
 0x13c   :  { %v254_v37 = vpop.f32.mrb[9].mxu0 }
 0x13d   :  { %v738_v38 = vpop.f32.mrb[10].mxu0 }
 0x13e   :  { %v290_v39 = vpack.c.bf16 %v738_v38, %v737_v36  ;;  %v257_v40 = vpop.f32.mrb[11].mxu0 }
 0x13f   :  { %v289_v41 = vpack.c.bf16 %v257_v40, %v254_v37 }
 0x140   :  { %676 = vst [vmem:[#allocation8 + $0x28] sm:$0xff] %v290_v39  }
 0x141   :  { %675 = vst [vmem:[#allocation8 + $0x20] sm:$0xff] %v289_v41   ;;  %767 = vmatprep.mubr.bf16.mxu1 %v289_v41 }
 0x142   :  { %768 = vmatmul.mubr.bf16.gmra.mrb[8].mxu1 %v290_v39 }
 0x143   :  { %v741_v42 = vpop.f32.mrb[12].mxu0 }
 0x144   :  { %v270_v43 = vpop.f32.mrb[13].mxu0 }
 0x145   :  { %v742_v44 = vpop.f32.mrb[14].mxu0 }
 0x146   :  { %v292_v45 = vpack.c.bf16 %v742_v44, %v741_v42  ;;  %v273_v46 = vpop.f32.mrb[15].mxu0 }
 0x147   :  { %v291_v47 = vpack.c.bf16 %v273_v46, %v270_v43 }
 0x148   :  { %678 = vst [vmem:[#allocation8 + $0x38] sm:$0xff] %v292_v45  }
 0x149   :  { %677 = vst [vmem:[#allocation8 + $0x30] sm:$0xff] %v291_v47   ;;  %771 = vmatprep.mubr.bf16.mxu1 %v291_v47 }
 0x14a   :  { %772 = vmatmul.mubr.bf16.gmra.mrb[12].mxu1 %v292_v45 }
 0x14b   :  { %885 = shalt.err (!%p882_p0)
}
 0x14c   :  { %s886_s5 = scalar_lea.hbm %s1042_s3, 1024 }
 0x14d   :  { %p887_p1 = scmp.ne.s32.totalorder %s1042_s3, %s886_s5  ;;  %p890_p2 = scmp.lt.u32.totalorder %s886_s5, %s1042_s3 }
 0x14f   :  { %p892_p3 = pnand %p890_p2, %p887_p1 }
 0x151   :  { %895 = shalt.err (!%p892_p3)
}
 0x152   :  { %553 = dma.vmem_to_hbm [thread:$0]  %s548_s25, 1024, %s1042_s3, [#allocation4], %s928_s27, %s928_s27, %s929_s28  }
 0x153   :  { %s932_s3 = smov [#allocation9]  }
 0x154   :  { %s559_s27 = sshll.u32 %s932_s3, 4  ;;  %s560_s27 = int_to_ptr.vmem [resolvable:$true] %s559_s27 }
 0x155   :  { %s896_s28 = scalar_lea.vmem %s560_s27, 2048  ;;  %p901_p5 = scmp.lt.s32.totalorder %s560_s27, %s560_s27 }
 0x156   :  { %p897_p4 = scmp.ne.s32.totalorder %s560_s27, %s896_s28  ;;  %p902_p6 = scmp.lt.s32.totalorder %s896_s28, %s896_s28 }
 0x158   :  { %p903_p7 = por %p902_p6, %p901_p5 }
 0x15a   :  { %p904_p8 = pnand %p903_p7, %p897_p4 }
 0x205   :  { %v761_v48 = vpop.f32.mrb[0].mxu1 }
 0x206   :  { %456 = vst [vmem:[#allocation9 + $0x10] sm:$0xff] %v761_v48  ;;  %v391_v49 = vpop.f32.mrb[1].mxu1 }
 0x207   :  { %454 = vst [vmem:[#allocation9] sm:$0xff] %v391_v49  ;;  %v762_v50 = vpop.f32.mrb[2].mxu1 }
 0x208   :  { %457 = vst [vmem:[#allocation9 + $0x18] sm:$0xff] %v762_v50  ;;  %v394_v51 = vpop.f32.mrb[3].mxu1 }
 0x209   :  { %455 = vst [vmem:[#allocation9 + $0x8] sm:$0xff] %v394_v51 }
 0x20d   :  { %v765_v52 = vpop.f32.mrb[4].mxu1 }
 0x20e   :  { %460 = vst [vmem:[#allocation9 + $0x30] sm:$0xff] %v765_v52  ;;  %v407_v53 = vpop.f32.mrb[5].mxu1 }
 0x20f   :  { %458 = vst [vmem:[#allocation9 + $0x20] sm:$0xff] %v407_v53  ;;  %v766_v54 = vpop.f32.mrb[6].mxu1 }
 0x210   :  { %461 = vst [vmem:[#allocation9 + $0x38] sm:$0xff] %v766_v54  ;;  %v410_v55 = vpop.f32.mrb[7].mxu1 }
 0x211   :  { %459 = vst [vmem:[#allocation9 + $0x28] sm:$0xff] %v410_v55 }
 0x215   :  { %v769_v56 = vpop.f32.mrb[8].mxu1 }
 0x216   :  { %464 = vst [vmem:[#allocation9 + $0x50] sm:$0xff] %v769_v56  ;;  %v423_v57 = vpop.f32.mrb[9].mxu1 }
 0x217   :  { %462 = vst [vmem:[#allocation9 + $0x40] sm:$0xff] %v423_v57  ;;  %v770_v58 = vpop.f32.mrb[10].mxu1 }
 0x218   :  { %465 = vst [vmem:[#allocation9 + $0x58] sm:$0xff] %v770_v58  ;;  %v426_v59 = vpop.f32.mrb[11].mxu1 }
 0x219   :  { %463 = vst [vmem:[#allocation9 + $0x48] sm:$0xff] %v426_v59 }
 0x21d   :  { %v773_v60 = vpop.f32.mrb[12].mxu1 }
 0x21e   :  { %468 = vst [vmem:[#allocation9 + $0x70] sm:$0xff] %v773_v60  ;;  %v439_v61 = vpop.f32.mrb[13].mxu1 }
 0x21f   :  { %466 = vst [vmem:[#allocation9 + $0x60] sm:$0xff] %v439_v61  ;;  %v774_v62 = vpop.f32.mrb[14].mxu1 }
 0x220   :  { %469 = vst [vmem:[#allocation9 + $0x78] sm:$0xff] %v774_v62  ;;  %v442_v63 = vpop.f32.mrb[15].mxu1 }
 0x221   :  { %467 = vst [vmem:[#allocation9 + $0x68] sm:$0xff] %v442_v63 }
 0x222   :  { %907 = shalt.err (!%p904_p8)
}
 0x223   :  { %s908_s13 = scalar_lea.hbm %s1043_s4, 2048 }
 0x224   :  { %p909_p9 = scmp.ne.s32.totalorder %s1043_s4, %s908_s13  ;;  %p912_p10 = scmp.lt.u32.totalorder %s908_s13, %s1043_s4 }
 0x226   :  { %p914_p11 = pnand %p912_p10, %p909_p9 }
 0x228   :  { %917 = shalt.err (!%p914_p11)
}
 0x229   :  { %s933_s19 = smov 128   ;;  %s934_s20 = smov 8  }
 0x22a   :  { %565 = dma.vmem_to_hbm [thread:$0]  %s560_s27, 2048, %s1043_s4, [#allocation10], %s933_s19, %s933_s19, %s934_s20  }
 0x22b   :  { %922 = dma.done.wait [#allocation4], 1024  }
 0x22c   :  { %923 = vsyncadd [#allocation4], 4294966272 }
 0x22d   :  { %924 = dma.done.wait [#allocation10], 2048  }
 0x22e   :  { %925 = vsyncadd [#allocation10], 4294965248 }
 0x22f   :  { %572 = vsyncpa [#allocation3], 1 }
 0x230   :  { %573 = vsyncpa [#allocation6], 1 }
 0x231   :  { %574 = vsyncpa [#allocation4], 1 }
 0x232   :  { %575 = vsyncpa [#allocation10], 1 }

</bundles_post_ra>
